<compile_context>
chip_gen: v7x
topology: tpu7x:2x2x1
jax: 0.10.0
libtpu: 0.0.40
codegen_flags: <defaults>
</compile_context>

<pallas_src>
import jax
import jax.numpy as jnp
from jax.experimental import pallas as pl
from jax.experimental.pallas import tpu as pltpu


def _round_up(x, m):
    return (x + m - 1) // m * m


# ----------------------------------------------------------------------------
# Pallas kernel: fused LightMapping MLP + prompt concat
#   y            = tanh(x @ W1 + b1) @ W2 + b2     (bf16 MXU, f32 accumulate)
#   out[:, 0, :] = y[:, :H]        (prefix_length == 1)
#   out[:, 1:,:] = cat
# ----------------------------------------------------------------------------
def _joint_embeds_kernel(x_ref, cat_ref, w1_ref, b1_ref, w2_ref, b2_ref, o_ref):
    H = o_ref.shape[-1]
    t_cat = cat_ref.shape[1]

    # bf16 operands -> full-rate MXU, f32 accumulator.
    h = jnp.dot(x_ref[...], w1_ref[...], preferred_element_type=jnp.float32)
    h = jnp.tanh(h + b1_ref[...])                       # f32 bias add + EUP tanh
    y = jnp.dot(h.astype(w2_ref.dtype), w2_ref[...],
                preferred_element_type=jnp.float32)
    y = y + b2_ref[...]                                 # f32 bias add

    # Fused scatter into the joint inputs_embeds tile.
    prefix = y[:, :H].astype(o_ref.dtype)[:, None, :]   # drop lane padding
    o_ref[:, pl.ds(0, 1), :] = prefix
    o_ref[:, pl.ds(1, t_cat), :] = cat_ref[...].astype(o_ref.dtype)


def joint_embeds_pallas(x_num, x_cat, w1, b1, w2, b2):
    """Fused LightMapping + concat -> (B, 1 + T_cat, H) inputs_embeds."""
    B, d_in = x_num.shape
    _, t_cat, H = x_cat.shape
    d_in_p, d_mid_p = w1.shape
    d_out_p = w2.shape[1]
    out_dtype = x_cat.dtype

    # Pad numeric features to the lane-aligned width and cast to bf16 (weights
    # are already bf16 / padded at init).
    x_p = jnp.zeros((B, d_in_p), jnp.bfloat16).at[:, :d_in].set(
        x_num.astype(jnp.bfloat16))

    # ---- batch tile: biggest tile that fits comfortably in scoped VMEM ------
    cat_bytes = jnp.dtype(x_cat.dtype).itemsize
    out_bytes = jnp.dtype(out_dtype).itemsize
    bytes_per_row = (d_in_p * 2                         # x tile (bf16)
                     + t_cat * H * cat_bytes            # cat tile
                     + (1 + t_cat) * H * out_bytes)     # out tile
    weight_bytes = ((d_in_p * d_mid_p + d_mid_p * d_out_p) * 2
                    + (d_mid_p + d_out_p) * 4)
    budget = 28 << 20                                   # safe on v5e/v6e/v7x
    tb = max((budget - weight_bytes) // (2 * bytes_per_row), 8)
    tb = min(int(tb) // 8 * 8, 1024)
    TB = B if B <= tb else tb                           # TB == B or multiple of 8
    grid = (pl.cdiv(B, TB),)

    cost = pl.CostEstimate(
        flops=2 * B * (d_in_p * d_mid_p + d_mid_p * d_out_p),
        transcendentals=B * d_mid_p,
        bytes_accessed=(B * d_in_p * 2 + B * t_cat * H * cat_bytes
                        + weight_bytes + B * (1 + t_cat) * H * out_bytes),
    )

    return pl.pallas_call(
        _joint_embeds_kernel,
        out_shape=jax.ShapeDtypeStruct((B, 1 + t_cat, H), out_dtype),
        grid=grid,
        in_specs=[
            pl.BlockSpec((TB, d_in_p), lambda i: (i, 0)),
            pl.BlockSpec((TB, t_cat, H), lambda i: (i, 0, 0)),
            pl.BlockSpec((d_in_p, d_mid_p), lambda i: (0, 0)),   # VMEM-resident
            pl.BlockSpec((1, d_mid_p), lambda i: (0, 0)),
            pl.BlockSpec((d_mid_p, d_out_p), lambda i: (0, 0)),  # VMEM-resident
            pl.BlockSpec((1, d_out_p), lambda i: (0, 0)),
        ],
        out_specs=pl.BlockSpec((TB, 1 + t_cat, H), lambda i: (i, 0, 0)),
        compiler_params=pltpu.CompilerParams(
            dimension_semantics=("parallel",),   # v7x: shard B-tiles over 2 TCs
            vmem_limit_bytes=40 << 20,
        ),
        cost_estimate=cost,
    )(x_p, x_cat, w1, b1.reshape(1, -1), w2, b2.reshape(1, -1))


# ----------------------------------------------------------------------------
# JointFeatureExtractor forward
# ----------------------------------------------------------------------------
class JointFeatureExtractorPallas:
    def __init__(self, num_feat_dim, language_model_hidden_dim, key):
        self.prefix_length = 1
        self.language_model_hidden_dim = language_model_hidden_dim

        d_in = num_feat_dim
        d_mid = num_feat_dim * self.prefix_length // 2
        d_out = language_model_hidden_dim * self.prefix_length
        self.d_in, self.d_mid, self.d_out = d_in, d_mid, d_out

        # 128-padded, MXU/lane-friendly parameter shapes (zero padding => exact).
        self.d_in_p = _round_up(d_in, 128)
        self.d_mid_p = _round_up(d_mid, 128)
        self.d_out_p = _round_up(d_out, 128)

        k1, k2, k3, k4 = jax.random.split(key, 4)
        lim1 = 1.0 / float(d_in) ** 0.5
        lim2 = 1.0 / float(d_mid) ** 0.5
        w1 = jax.random.uniform(k1, (d_in, d_mid), jnp.float32, -lim1, lim1)
        b1 = jax.random.uniform(k2, (d_mid,), jnp.float32, -lim1, lim1)
        w2 = jax.random.uniform(k3, (d_mid, d_out), jnp.float32, -lim2, lim2)
        b2 = jax.random.uniform(k4, (d_out,), jnp.float32, -lim2, lim2)

        # Matmul operands stored in bf16 (cast once here, not per call);
        # biases kept in f32 so bias adds stay on the f32 accumulator.
        self.w1 = (jnp.zeros((self.d_in_p, self.d_mid_p), jnp.bfloat16)
                   .at[:d_in, :d_mid].set(w1.astype(jnp.bfloat16)))
        self.b1 = jnp.zeros((self.d_mid_p,), jnp.float32).at[:d_mid].set(b1)
        self.w2 = (jnp.zeros((self.d_mid_p, self.d_out_p), jnp.bfloat16)
                   .at[:d_mid, :d_out].set(w2.astype(jnp.bfloat16)))
        self.b2 = jnp.zeros((self.d_out_p,), jnp.float32).at[:d_out].set(b2)

    def __call__(self, inputs, force_pallas=False):
        x_num = inputs['num']              # (B, D_num)
        x_cat = inputs['cat']              # (B, T_cat, H)
        B = x_num.shape[0]

        # Size gate: tiny problems are pure pallas_call launch overhead — let
        # XLA fuse them. Pallas path is used at real sizes (or when forced).
        if force_pallas or (B >= 256 and self.language_model_hidden_dim >= 128):
            embeds = joint_embeds_pallas(x_num, x_cat, self.w1, self.b1,
                                         self.w2, self.b2)
        else:
            embeds = self._xla_forward(x_num, x_cat)

        # TODO(synk): `self.language_model({'inputs_embeds': embeds})` — the
        # TextLanguageModel backbone is an external, unspecified transformer,
        # so this module returns the joint inputs_embeds tensor instead.
        return embeds

    def _xla_forward(self, x_num, x_cat):
        """Pure-JAX path with identical bf16/f32 math (also used as reference)."""
        B = x_num.shape[0]
        x = (jnp.zeros((B, self.d_in_p), jnp.bfloat16)
             .at[:, :self.d_in].set(x_num.astype(jnp.bfloat16)))
        h = jnp.tanh(jnp.dot(x, self.w1, preferred_element_type=jnp.float32)
                     + self.b1)
        y = jnp.dot(h.astype(jnp.bfloat16), self.w2,
                    preferred_element_type=jnp.float32) + self.b2
        y = y[:, :self.language_model_hidden_dim].astype(x_cat.dtype)
        num_mapped = y.reshape(B, self.prefix_length,
                               self.language_model_hidden_dim)
        return jnp.concatenate([num_mapped, x_cat], axis=1)

    def get_output_dim(self):
        return self.language_model_hidden_dim


if __name__ == "__main__":
    key = jax.random.PRNGKey(0)
    k_params, k_num, k_cat = jax.random.split(key, 3)

    # Small demo shapes: batch=2, numeric feature dim=8, prompt seq=8, hidden=32.
    B, D_NUM, T_CAT, HIDDEN = 2, 8, 8, 32

    model = JointFeatureExtractorPallas(num_feat_dim=D_NUM,
                                        language_model_hidden_dim=HIDDEN,
                                        key=k_params)

    inputs = {
        'num': jax.random.normal(k_num, (B, D_NUM), jnp.float32),
        'cat': jax.random.normal(k_cat, (B, T_CAT, HIDDEN), jnp.float32),
    }

    # Force the Pallas path so the kernel is exercised even at demo scale.
    out = model(inputs, force_pallas=True)
    out = jax.block_until_ready(out)

    # Reference: same bf16-operand / f32-accumulate math in plain XLA.
    ref = model._xla_forward(inputs['num'], inputs['cat'])
    assert out.shape == (B, 1 + T_CAT, HIDDEN), out.shape
    assert jnp.allclose(out, ref, atol=1e-3, rtol=1e-3), \
        float(jnp.max(jnp.abs(out - ref)))

    print("KERNEL_OK")
</pallas_src>

<mosaic_0001>
module attributes {stable_mosaic.version = 11 : i64} {
  func.func @_joint_embeds_kernel(%arg0: i32, %arg1: memref<2x128xbf16, #tpu.memory_space<vmem>>, %arg2: memref<2x8x32xf32, #tpu.memory_space<vmem>>, %arg3: memref<128x128xbf16, #tpu.memory_space<vmem>>, %arg4: memref<1x128xf32, #tpu.memory_space<vmem>>, %arg5: memref<128x128xbf16, #tpu.memory_space<vmem>>, %arg6: memref<1x128xf32, #tpu.memory_space<vmem>>, %arg7: memref<2x9x32xf32, #tpu.memory_space<vmem>>) attributes {dimension_semantics = [#tpu.dimension_semantics<parallel>], iteration_bounds = array<i64: 1>, scalar_prefetch = 0 : i64, scratch_operands = 0 : i64, tpu.core_type = #tpu.core_type<tc>, window_params = [{transform_indices = @transform_0, window_bounds = array<i64: 2, 128>}, {transform_indices = @transform_1, window_bounds = array<i64: 2, 8, 32>}, {pipeline_mode = #tpu.pipeline_mode<synchronous>, transform_indices = @transform_2, window_bounds = array<i64: 128, 128>}, {pipeline_mode = #tpu.pipeline_mode<synchronous>, transform_indices = @transform_3, window_bounds = array<i64: 1, 128>}, {pipeline_mode = #tpu.pipeline_mode<synchronous>, transform_indices = @transform_4, window_bounds = array<i64: 128, 128>}, {pipeline_mode = #tpu.pipeline_mode<synchronous>, transform_indices = @transform_5, window_bounds = array<i64: 1, 128>}, {transform_indices = @transform_6, window_bounds = array<i64: 2, 9, 32>}]} {
    %c0 = arith.constant 0 : index
    %c0_0 = arith.constant 0 : index
    %0 = vector.load %arg1[%c0, %c0_0] : memref<2x128xbf16, #tpu.memory_space<vmem>>, vector<2x128xbf16>
    %c0_1 = arith.constant 0 : index
    %c0_2 = arith.constant 0 : index
    %1 = vector.load %arg3[%c0_1, %c0_2] : memref<128x128xbf16, #tpu.memory_space<vmem>>, vector<128x128xbf16>
    %cst = arith.constant dense<0.000000e+00> : vector<2x128xf32>
    %2 = tpu.matmul %0, %1, %cst {dimension_numbers = #tpu.dot_dimension_numbers<[1], [0], [0], [1], [0, 0, 1, 1], [], []>} : vector<2x128xbf16>, vector<128x128xbf16>, vector<2x128xf32> -> vector<2x128xf32>
    %c0_3 = arith.constant 0 : index
    %c0_4 = arith.constant 0 : index
    %3 = vector.load %arg4[%c0_3, %c0_4] : memref<1x128xf32, #tpu.memory_space<vmem>>, vector<1x128xf32>
    %4 = vector.broadcast %3 : vector<1x128xf32> to vector<2x128xf32>
    %5 = arith.addf %2, %4 : vector<2x128xf32>
    %6 = math.tanh %5 : vector<2x128xf32>
    %7 = arith.truncf %6 : vector<2x128xf32> to vector<2x128xbf16>
    %c0_5 = arith.constant 0 : index
    %c0_6 = arith.constant 0 : index
    %8 = vector.load %arg5[%c0_5, %c0_6] : memref<128x128xbf16, #tpu.memory_space<vmem>>, vector<128x128xbf16>
    %cst_7 = arith.constant dense<0.000000e+00> : vector<2x128xf32>
    %9 = tpu.matmul %7, %8, %cst_7 {dimension_numbers = #tpu.dot_dimension_numbers<[1], [0], [0], [1], [0, 0, 1, 1], [], []>} : vector<2x128xbf16>, vector<128x128xbf16>, vector<2x128xf32> -> vector<2x128xf32>
    %c0_8 = arith.constant 0 : index
    %c0_9 = arith.constant 0 : index
    %10 = vector.load %arg6[%c0_8, %c0_9] : memref<1x128xf32, #tpu.memory_space<vmem>>, vector<1x128xf32>
    %11 = vector.broadcast %10 : vector<1x128xf32> to vector<2x128xf32>
    %12 = arith.addf %9, %11 : vector<2x128xf32>
    %13 = vector.extract_strided_slice %12 {offsets = [0, 0], sizes = [2, 32], strides = [1, 1]} : vector<2x128xf32> to vector<2x32xf32>
    %14 = vector.shape_cast %13 : vector<2x32xf32> to vector<2x1x32xf32>
    %c0_10 = arith.constant 0 : index
    %c0_11 = arith.constant 0 : index
    %c0_12 = arith.constant 0 : index
    %15 = vector.load %arg7[%c0_10, %c0_11, %c0_12] : memref<2x9x32xf32, #tpu.memory_space<vmem>>, vector<2x1x32xf32>
    tpu.vector_store %arg7[%c0_10, %c0_11, %c0_12], %14 {strides = array<i32>} : memref<2x9x32xf32, #tpu.memory_space<vmem>>, vector<2x1x32xf32>,
    %c0_13 = arith.constant 0 : index
    %c0_14 = arith.constant 0 : index
    %c0_15 = arith.constant 0 : index
    %16 = vector.load %arg2[%c0_13, %c0_14, %c0_15] : memref<2x8x32xf32, #tpu.memory_space<vmem>>, vector<2x8x32xf32>
    %c0_16 = arith.constant 0 : index
    %c1 = arith.constant 1 : index
    %c0_17 = arith.constant 0 : index
    %17 = vector.load %arg7[%c0_16, %c1, %c0_17] : memref<2x9x32xf32, #tpu.memory_space<vmem>>, vector<2x8x32xf32>
    tpu.vector_store %arg7[%c0_16, %c1, %c0_17], %16 {strides = array<i32>} : memref<2x9x32xf32, #tpu.memory_space<vmem>>, vector<2x8x32xf32>,
    return
  }
  func.func @transform_0(%arg0: i32) -> (i32, i32) {
    %c0_i32 = arith.constant 0 : i32
    %c0_i32_0 = arith.constant 0 : i32
    return %arg0, %c0_i32 : i32, i32
  }
  func.func @transform_1(%arg0: i32) -> (i32, i32, i32) {
    %c0_i32 = arith.constant 0 : i32
    %c0_i32_0 = arith.constant 0 : i32
    %c0_i32_1 = arith.constant 0 : i32
    return %arg0, %c0_i32, %c0_i32_0 : i32, i32, i32
  }
  func.func @transform_2(%arg0: i32) -> (i32, i32) {
    %c0_i32 = arith.constant 0 : i32
    %c0_i32_0 = arith.constant 0 : i32
    %c0_i32_1 = arith.constant 0 : i32
    return %c0_i32, %c0_i32_0 : i32, i32
  }
  func.func @transform_3(%arg0: i32) -> (i32, i32) {
    %c0_i32 = arith.constant 0 : i32
    %c0_i32_0 = arith.constant 0 : i32
    %c0_i32_1 = arith.constant 0 : i32
    return %c0_i32, %c0_i32_0 : i32, i32
  }
  func.func @transform_4(%arg0: i32) -> (i32, i32) {
    %c0_i32 = arith.constant 0 : i32
    %c0_i32_0 = arith.constant 0 : i32
    %c0_i32_1 = arith.constant 0 : i32
    return %c0_i32, %c0_i32_0 : i32, i32
  }
  func.func @transform_5(%arg0: i32) -> (i32, i32) {
    %c0_i32 = arith.constant 0 : i32
    %c0_i32_0 = arith.constant 0 : i32
    %c0_i32_1 = arith.constant 0 : i32
    return %c0_i32, %c0_i32_0 : i32, i32
  }
  func.func @transform_6(%arg0: i32) -> (i32, i32, i32) {
    %c0_i32 = arith.constant 0 : i32
    %c0_i32_0 = arith.constant 0 : i32
    %c0_i32_1 = arith.constant 0 : i32
    return %arg0, %c0_i32, %c0_i32_0 : i32, i32, i32
  }
}

</mosaic_0001>

<bundles_post_ra>
// kernel: tpu_custom_call.1
= control target key start
LH: loop header
LB: loop body
LE: loop exit
PB: predicated region body
PF: predicated region fallthrough
CT: control target
= control target key end

     0   :  { %11 = vsyncpa [#allocation3], 0  ;;  %s653_s0 = inlined_call_operand.hbm [shape: bf16[2,128], index: 0, kind: input, shape index: {}]   ;;  %s654_s1 = inlined_call_operand.hbm [shape: f32[2,8,32], index: 1, kind: input, shape index: {}]   ;;  %s655_s2 = inlined_call_operand.hbm [shape: bf16[128,128], index: 2, kind: input, shape index: {}]   ;;  %s656_s3 = inlined_call_operand.vmem [shape: f32[1,128], index: 3, kind: input, shape index: {}]   ;;  %s657_s4 = inlined_call_operand.hbm [shape: bf16[128,128], index: 4, kind: input, shape index: {}]   ;;  %s658_s5 = inlined_call_operand.vmem [shape: f32[1,128], index: 5, kind: input, shape index: {}]   ;;  %s659_s6 = inlined_call_operand.vmem [shape: f32[2,9,32], index: 6, kind: output, shape index: {}]  }
   0x1   :  { %12 = vsyncpa [#allocation5], 0 }
   0x2   :  { %13 = vsyncpa [#allocation8], 0  ;;  %s541_s21 = smov [#allocation4]   ;;  %s447_s25 = scalar_lea.hbm %s654_s1, 256 }
   0x3   :  { %s29_s22 = sshll.u32 %s541_s21, 4  ;;  %p448_p0 = scmp.ne.s32.totalorder %s654_s1, %s447_s25  ;;  %s30_s22 = int_to_ptr.vmem [resolvable:$true] %s29_s22 }
   0x4   :  { %p451_p1 = scmp.lt.u32.totalorder %s447_s25, %s654_s1 }
   0x6   :  { %p453_p2 = pnand %p451_p1, %p448_p0 }
   0x8   :  { %456 = shalt.err (!%p453_p2)
}
   0x9   :  { %s457_s30 = scalar_lea.vmem %s30_s22, 256  ;;  %p462_p4 = scmp.lt.s32.totalorder %s30_s22, %s30_s22 }
   0xa   :  { %p458_p3 = scmp.ne.s32.totalorder %s30_s22, %s457_s30  ;;  %p463_p5 = scmp.lt.s32.totalorder %s457_s30, %s457_s30 }
   0xc   :  { %p464_p6 = por %p463_p5, %p462_p4 }
   0xe   :  { %p465_p7 = pnand %p464_p6, %p458_p3 }
  0x10   :  { %468 = shalt.err (!%p465_p7)
}
  0x11   :  { %s542_s7 = smov 128   ;;  %s543_s8 = smov 8  }
  0x12   :  { %35 = dma.hbm_to_vmem [thread:$0]  %s654_s1, 256, %s30_s22, [#allocation5], %s542_s7, %s542_s7, %s543_s8  }
  0x13   :  { %s544_s11 = smov [#allocation2]   ;;  %s545_s13 = smov [#allocation6]  }
  0x14   :  { %s20_s12 = sshll.u32 %s544_s11, 4  ;;  %s41_s14 = sshll.u32 %s545_s13, 4  ;;  %s21_s12 = int_to_ptr.vmem [resolvable:$true] %s20_s12  ;;  %s42_s14 = int_to_ptr.vmem [resolvable:$true] %s41_s14 }
  0x15   :  { %s469_s17 = scalar_lea.hbm %s653_s0, 16 }
  0x16   :  { %p470_p8 = scmp.ne.s32.totalorder %s653_s0, %s469_s17  ;;  %p473_p9 = scmp.lt.u32.totalorder %s469_s17, %s653_s0 }
  0x18   :  { %p475_p10 = pnand %p473_p9, %p470_p8 }
  0x1a   :  { %478 = shalt.err (!%p475_p10)
}
  0x1b   :  { %s479_s1 = scalar_lea.vmem %s21_s12, 16  ;;  %s483_s22 = scalar_lea.vmem %s21_s12, 32 }
  0x1c   :  { %p480_p11 = scmp.ne.s32.totalorder %s21_s12, %s479_s1  ;;  %p484_p12 = scmp.lt.s32.totalorder %s21_s12, %s21_s12 }
  0x1d   :  { %p485_p13 = scmp.lt.s32.totalorder %s483_s22, %s479_s1 }
  0x1f   :  { %p486_p0 = por %p485_p13, %p484_p12 }
  0x21   :  { %p487_p1 = pnand %p486_p0, %p480_p11 }
  0x23   :  { %490 = shalt.err (!%p487_p1)
}
  0x24   :  { %23 = dma.hbm_to_vmem [thread:$0]  %s653_s0, 16, %s21_s12, [#allocation3]  }
  0x25   :  { %s491_s27 = scalar_lea.hbm %s655_s2, 1024 }
  0x26   :  { %p492_p2 = scmp.ne.s32.totalorder %s655_s2, %s491_s27  ;;  %p495_p3 = scmp.lt.u32.totalorder %s491_s27, %s655_s2 }
  0x28   :  { %p497_p4 = pnand %p495_p3, %p492_p2 }
  0x2a   :  { %500 = shalt.err (!%p497_p4)
}
  0x2b   :  { %s501_s8 = scalar_lea.vmem %s42_s14, 1024  ;;  %p506_p6 = scmp.lt.s32.totalorder %s42_s14, %s42_s14 }
  0x2c   :  { %p502_p5 = scmp.ne.s32.totalorder %s42_s14, %s501_s8  ;;  %p507_p7 = scmp.lt.s32.totalorder %s501_s8, %s501_s8 }
  0x2e   :  { %p508_p8 = por %p507_p7, %p506_p6 }
  0x30   :  { %p509_p9 = pnand %p508_p8, %p502_p5 }
  0x32   :  { %512 = shalt.err (!%p509_p9)
}
  0x33   :  { %s546_s0 = smov 64   ;;  %s547_s9 = smov 4  }
  0x34   :  { %47 = dma.hbm_to_vmem [thread:$0]  %s655_s2, 1024, %s42_s14, [#allocation5], %s546_s0, %s546_s0, %s547_s9  }
  0x35   :  { %s548_s12 = smov [#allocation7]   ;;  %s513_s17 = scalar_lea.hbm %s657_s4, 1024 }
  0x36   :  { %s55_s13 = sshll.u32 %s548_s12, 4  ;;  %p514_p10 = scmp.ne.s32.totalorder %s657_s4, %s513_s17  ;;  %s56_s13 = int_to_ptr.vmem [resolvable:$true] %s55_s13 }
  0x37   :  { %p517_p11 = scmp.lt.u32.totalorder %s513_s17, %s657_s4 }
  0x39   :  { %p519_p12 = pnand %p517_p11, %p514_p10 }
  0x3b   :  { %522 = shalt.err (!%p519_p12)
}
  0x3c   :  { %s523_s1 = scalar_lea.vmem %s56_s13, 1024  ;;  %p528_p0 = scmp.lt.s32.totalorder %s56_s13, %s56_s13 }
  0x3d   :  { %p524_p13 = scmp.ne.s32.totalorder %s56_s13, %s523_s1  ;;  %p529_p1 = scmp.lt.s32.totalorder %s523_s1, %s523_s1 }
  0x3f   :  { %p530_p2 = por %p529_p1, %p528_p0 }
  0x41   :  { %p531_p3 = pnand %p530_p2, %p524_p13 }
  0x43   :  { %534 = shalt.err (!%p531_p3)
}
  0x44   :  { %61 = dma.hbm_to_vmem [thread:$0]  %s657_s4, 1024, %s56_s13, [#allocation8], %s546_s0, %s546_s0, %s547_s9  }
  0x45   :  { %535 = dma.done.wait [#allocation3], 16  }
  0x46   :  { %536 = vsyncadd [#allocation3], 4294967280 }
  0x47   :  { %537 = dma.done.wait [#allocation5], 1280  }
  0x48   :  { %538 = vsyncadd [#allocation5], 4294966016 }
  0x49   :  { %539 = dma.done.wait [#allocation8], 1024  }
  0x4a   :  { %540 = vsyncadd [#allocation8], 4294966272  ;;  %v549_v0 = vmov 0.0   ;;  %vm550_vm0 = vmmov 0   ;;  %vm332_vm1 = vcmask 261120   ;;  %v330_v1 = vld [vmem:[#allocation4] sm:$0xff]  ;;  %v306_v30 = vlaneseq }
  0x4b   :  { %378 = vmatprep.subr.bf16.mxu0 %v549_v0  ;;  %394 = vmatprep.mubr.msk.bf16.mxu0 %vm550_vm0, %v549_v0  ;;  %v331_v2 = vld [vmem:[#allocation4 + $0x8] sm:$0xff]  ;;  %333 = vst.msk [vmem:[%s659_s6 + $0x1] sm:$0xff] %vm332_vm1, %v330_v1  ;;  %v429_v3 = vld [vmem:[#allocation6] sm:$0xff]   ;;  %v430_v4 = vld [vmem:[#allocation6 + $0x8] sm:$0xff]   ;;  %v551_v28 = vmov 1966171168  }
  0x4c   :  { %398 = vmatprep.subr.bf16.mxu1 %v549_v0  ;;  %414 = vmatprep.mubr.msk.bf16.mxu1 %vm550_vm0, %v549_v0  ;;  %334 = vst.msk [vmem:[%s659_s6 + $0x11] sm:$0xff] %vm332_vm1, %v331_v2  ;;  %v431_v5 = vld [vmem:[#allocation6 + $0x10] sm:$0xff]   ;;  %v437_v6 = vld [vmem:[#allocation7] sm:$0xff]   ;;  %v432_v7 = vld [vmem:[#allocation6 + $0x18] sm:$0xff]   ;;  %v304_v29 = vunpack.c.l.s4 %v551_v28  ;;  %v307_v32 = vshrl.u32 %v306_v30, 7  ;;  %vm327_vm2 = vcmask 253952  }
  0x4d   :  { %379 = vmatpush3.bf16.msra.mxu0 %v429_v3  ;;  %399 = vmatpush3.bf16.msra.mxu1 %v437_v6  ;;  %v438_v8 = vld [vmem:[#allocation7 + $0x8] sm:$0xff]   ;;  %v433_v9 = vld [vmem:[#allocation6 + $0x20] sm:$0xff]   ;;  %v439_v10 = vld [vmem:[#allocation7 + $0x10] sm:$0xff]  }
  0x4e   :  { %380 = vmatprep.subr.bf16.mxu0 %v549_v0  ;;  %400 = vmatprep.subr.bf16.mxu1 %v549_v0  ;;  %v434_v11 = vld [vmem:[#allocation6 + $0x28] sm:$0xff]   ;;  %v440_v12 = vld [vmem:[#allocation7 + $0x18] sm:$0xff]   ;;  %v435_v13 = vld [vmem:[#allocation6 + $0x30] sm:$0xff]   ;;  %v305_v31 = vunpack.c.0.s8 %v304_v29 }
  0x4f   :  { %v436_v14 = vld [vmem:[#allocation6 + $0x38] sm:$0xff]   ;;  %v77_v15 = vld [vmem:[#allocation2] sm:$0x1]  ;;  %v441_v16 = vld [vmem:[#allocation7 + $0x20] sm:$0xff]  }
  0x50   :  { %v442_v17 = vld [vmem:[#allocation7 + $0x28] sm:$0xff]   ;;  %v443_v18 = vld [vmem:[#allocation7 + $0x30] sm:$0xff]   ;;  %v444_v19 = vld [vmem:[#allocation7 + $0x38] sm:$0xff]   ;;  %v308_v34 = vsub.s32 %v305_v31, %v307_v32 }
  0x51   :  { %381 = vmatpush3.bf16.msra.mxu0 %v430_v4  ;;  %401 = vmatpush3.bf16.msra.mxu1 %v438_v8  ;;  %v342_v20 = vld [vmem:[%s656_s3] ss:$0 sm:$0xff] }
  0x52   :  { %382 = vmatprep.subr.bf16.mxu0 %v549_v0  ;;  %402 = vmatprep.subr.bf16.mxu1 %v549_v0  ;;  %v351_v33 = vld [vmem:[%s658_s5] ss:$0 sm:$0xff] }
  0x55   :  { %383 = vmatpush3.bf16.msra.mxu0 %v431_v5  ;;  %403 = vmatpush3.bf16.msra.mxu1 %v439_v10 }
  0x56   :  { %384 = vmatprep.subr.bf16.mxu0 %v549_v0  ;;  %404 = vmatprep.subr.bf16.mxu1 %v549_v0 }
  0x59   :  { %385 = vmatpush3.bf16.msra.mxu0 %v432_v7  ;;  %405 = vmatpush3.bf16.msra.mxu1 %v440_v12 }
  0x5a   :  { %386 = vmatprep.subr.bf16.mxu0 %v549_v0  ;;  %406 = vmatprep.subr.bf16.mxu1 %v549_v0 }
  0x5d   :  { %387 = vmatpush3.bf16.msra.mxu0 %v433_v9  ;;  %407 = vmatpush3.bf16.msra.mxu1 %v441_v16 }
  0x5e   :  { %388 = vmatprep.subr.bf16.mxu0 %v549_v0  ;;  %408 = vmatprep.subr.bf16.mxu1 %v549_v0 }
  0x61   :  { %389 = vmatpush3.bf16.msra.mxu0 %v434_v11  ;;  %409 = vmatpush3.bf16.msra.mxu1 %v442_v17 }
  0x62   :  { %390 = vmatprep.subr.bf16.mxu0 %v549_v0  ;;  %410 = vmatprep.subr.bf16.mxu1 %v549_v0 }
  0x65   :  { %391 = vmatpush3.bf16.msra.mxu0 %v435_v13  ;;  %411 = vmatpush3.bf16.msra.mxu1 %v443_v18 }
  0x66   :  { %392 = vmatprep.subr.bf16.mxu0 %v549_v0  ;;  %412 = vmatprep.subr.bf16.mxu1 %v549_v0 }
  0x69   :  { %393 = vmatpush3.bf16.msra.mxu0 %v436_v14  ;;  %413 = vmatpush3.bf16.msra.mxu1 %v444_v19 }
  0x6c   :  { %395 = vmatmul.mubr.bf16.vlgmr.msra.gmra.mrb[0].mxu0 %v77_v15 }
 0x13f   :  { %v183_v21 = vpop.f32.mrb[0].mxu0 }
 0x140   :  { %v184_v22 = vadd.f32 %v342_v20, %v183_v21  ;;  %v396_v23 = vpop.f32.mrb[1].mxu0 }
 0x141   :  { %v186_v24 = vpop.f32.mrb[2].mxu0 }
 0x142   :  { %445 = vtanh.f32 %v184_v22  ;;  %v397_v25 = vpop.f32.mrb[3].mxu0 }
 0x14c   :  { %v446_v26 = vpop.eup %445 }
 0x14d   :  { %v190_v27 = vpack.c.bf16 %v446_v26, %v446_v26 }
 0x14f   :  { %415 = vmatmul.mubr.bf16.vlgmr.msra.gmra.mrb[0].mxu1 %v190_v27 }
 0x222   :  { %v296_v35 = vpop.f32.mrb[0].mxu1 }
 0x223   :  { %v297_v36 = vadd.f32 %v351_v33, %v296_v35  ;;  %v416_v37 = vpop.f32.mrb[1].mxu1 }
 0x224   :  { %v299_v38 = vpop.f32.mrb[2].mxu1 }
 0x225   :  { %v309_v39 = vrot.slane %v297_v36, %v308_v34  ;;  %v417_v40 = vpop.f32.mrb[3].mxu1 }
 0x227   :  { %v310_v41 = vcombine.high %v309_v39, %v309_v39  ;;  %v317_v42 = vrot.slane %v309_v39, %v308_v34 }
 0x229   :  { %v324_v43 = vrot.slane %v310_v41, %v308_v34  ;;  %328 = vst.msk [vmem:[%s659_s6] sm:$0x1] %vm327_vm2, %v317_v42 }
 0x22b   :  { %329 = vst.msk [vmem:[%s659_s6 + $0x10] sm:$0x1] %vm327_vm2, %v324_v43 }
 0x22c   :  { %339 = vsyncpa [#allocation3], 1 }
 0x22d   :  { %340 = vsyncpa [#allocation5], 1 }
 0x22e   :  { %341 = vsyncpa [#allocation8], 1 }

</bundles_post_ra>
